<compile_context>
chip_gen: v7x
topology: tpu7x:2x2x1
jax: 0.10.0
libtpu: 0.0.40
codegen_flags: <defaults>
</compile_context>

<pallas_src>
import functools

import jax
import jax.numpy as jnp
from jax.experimental import pallas as pl
from jax.experimental.pallas import tpu as pltpu


def _round_up(x: int, m: int) -> int:
    return (x + m - 1) // m * m


def _ranking_loss_kernel(p_col_ref, t_col_ref, p_row_ref, t_row_ref,
                         loss_out_ref, acc_loss_ref, *, margin: float):
    j = pl.program_id(1)
    nj = pl.num_programs(1)

    @pl.when(j == 0)
    def _init():
        acc_loss_ref[...] = jnp.zeros_like(acc_loss_ref)

    p_col = p_col_ref[...]          # (TM, 1)
    t_col = t_col_ref[...]          # (TM, 1)
    t_row = t_row_ref[...]          # (1, TN)

    # Fold the margin into the lane-dense row tile once per (1, TN) tile:
    # margin - (p_col - p_row) == (p_row + margin) - p_col.
    row_m = p_row_ref[...] + margin                         # (1, TN)

    # Ordered-pair predicate + fused hinge (single select, no mask multiply).
    cond = t_col > t_row                                    # (TM, TN) bool
    hinge = jnp.maximum(row_m - p_col, 0.0)                 # (TM, TN) f32
    pair_loss = jnp.where(cond, hinge, 0.0)

    # Row (sublane) reduction on the MXU: ones(1,TM) @ (TM,TN) -> (1,TN),
    # accumulated across j-tiles in VMEM scratch; overlaps with VPU work.
    tm = p_col_ref.shape[0]
    ones_row = jnp.ones((1, tm), jnp.float32)
    acc_loss_ref[...] += jnp.dot(ones_row, pair_loss,
                                 preferred_element_type=jnp.float32)

    # Write this i-tile's loss partial once, at the last j step (lane-dense).
    @pl.when(j == nj - 1)
    def _finalize():
        total = jnp.sum(acc_loss_ref[...])
        loss_out_ref[...] = jnp.full(loss_out_ref.shape, total, jnp.float32)


def _exact_pair_count(targets: jax.Array):
    """Number of unordered pairs (i, j) with targets[i] != targets[j].

    count = B(B-1)/2 - sum over tie groups g of |g|(|g|-1)/2, computed via a
    sort + searchsorted ("position within its tie run").  Exact in integers.
    """
    b = targets.shape[0]
    total_pairs = b * (b - 1) // 2          # static Python int, exact
    ts = jnp.sort(targets)
    # For each position, index of the first element equal to it (runs are
    # contiguous in the sorted array); position-within-run summed over all
    # elements equals the number of tied unordered pairs.
    start = jnp.searchsorted(ts, ts, side="left")
    within = jnp.arange(b, dtype=start.dtype) - start
    tie_pairs = jnp.sum(within)
    return (jnp.asarray(total_pairs, tie_pairs.dtype) - tie_pairs).astype(jnp.float32)


def ranking_loss(predictions: jax.Array, targets: jax.Array,
                 margin: float = 0.1) -> jax.Array:
    """Pallas TPU implementation of RankingLoss.forward with pairs=None."""
    assert predictions.ndim == 1 and targets.ndim == 1
    assert predictions.shape == targets.shape
    b = predictions.shape[0]

    p = predictions.astype(jnp.float32)
    t = targets.astype(jnp.float32)

    # Tile sizes: big enough to amortize the ~600-cycle per-grid-step overhead,
    # small enough that the single materialized (TM, TN) f32 tile (4 MiB at
    # 512 x 2048) stays well inside every generation's scoped VMEM (incl. v7x).
    # Additionally keep n_i >= 2 whenever B allows it so the "parallel" i axis
    # can be split across v7x's two TensorCores.
    tm_half = _round_up((b + 1) // 2, 8)
    tm = min(512, tm_half)
    tn = min(2048, _round_up(b, 128))
    b_i = _round_up(b, tm)
    b_j = _round_up(b, tn)
    n_i = b_i // tm
    n_j = b_j // tn

    # Padded copies. Column targets padded with -inf, row targets with +inf:
    # the strict ">" predicate is always false for padded rows/cols, so no
    # spurious pairs and no extra in-kernel masking.
    p_col = jnp.pad(p, (0, b_i - b)).reshape(b_i, 1)
    t_col = jnp.pad(t, (0, b_i - b), constant_values=-jnp.inf).reshape(b_i, 1)
    p_row = jnp.pad(p, (0, b_j - b)).reshape(1, b_j)
    t_row = jnp.pad(t, (0, b_j - b), constant_values=jnp.inf).reshape(1, b_j)

    kernel = functools.partial(_ranking_loss_kernel, margin=float(margin))

    loss_out = pl.pallas_call(
        kernel,
        out_shape=jax.ShapeDtypeStruct((n_i, 8, 128), jnp.float32),
        grid_spec=pltpu.PrefetchScalarGridSpec(
            num_scalar_prefetch=0,
            grid=(n_i, n_j),
            in_specs=[
                pl.BlockSpec((tm, 1), lambda i, j: (i, 0)),   # predictions, i-tile
                pl.BlockSpec((tm, 1), lambda i, j: (i, 0)),   # targets,     i-tile
                pl.BlockSpec((1, tn), lambda i, j: (0, j)),   # predictions, j-tile
                pl.BlockSpec((1, tn), lambda i, j: (0, j)),   # targets,     j-tile
            ],
            out_specs=pl.BlockSpec((1, 8, 128), lambda i, j: (i, 0, 0)),
            scratch_shapes=[
                pltpu.VMEM((1, tn), jnp.float32),   # running loss partials
            ],
        ),
        compiler_params=pltpu.CompilerParams(
            dimension_semantics=("parallel", "arbitrary"),
            vmem_limit_bytes=32 * 1024 * 1024,
        ),
    )(p_col, t_col, p_row, t_row)

    total = jnp.sum(loss_out[:, 0, 0])
    # Exact denominator from targets only (no in-kernel count path).
    count = _exact_pair_count(t)
    return jnp.where(count > 0.0, total / jnp.maximum(count, 1.0), 0.0)


def _ranking_loss_ref(predictions, targets, margin=0.1):
    """Pure-JAX reference matching the PyTorch loop semantics."""
    p = predictions.astype(jnp.float32)
    t = targets.astype(jnp.float32)
    mask = (t[:, None] > t[None, :]).astype(jnp.float32)
    diff = p[:, None] - p[None, :]
    pair_loss = jnp.maximum(margin - diff, 0.0) * mask
    count = jnp.sum(mask)
    return jnp.where(count > 0, jnp.sum(pair_loss) / jnp.maximum(count, 1.0), 0.0)


if __name__ == "__main__":
    key = jax.random.PRNGKey(0)
    k1, k2, k3, k4, k5, k6 = jax.random.split(key, 6)

    # Primary check: small batch matching the module's (batch,) inputs.
    batch = 8
    predictions = jax.random.normal(k1, (batch,), dtype=jnp.float32)
    targets = jax.random.normal(k2, (batch,), dtype=jnp.float32)

    loss = ranking_loss(predictions, targets, margin=0.1)
    loss = jax.block_until_ready(loss)
    ref = _ranking_loss_ref(predictions, targets, margin=0.1)
    assert jnp.allclose(loss, ref, atol=1e-5, rtol=1e-5), (loss, ref)

    # Secondary check: exercises n_i=2 grid, padding and j-accumulation.
    # (f32 accumulation across ~180k pairs -> slightly looser tolerance.)
    batch2 = 600
    p2 = jax.random.normal(k3, (batch2,), dtype=jnp.float32)
    t2 = jax.random.normal(k4, (batch2,), dtype=jnp.float32)
    loss2 = jax.block_until_ready(ranking_loss(p2, t2, margin=0.1))
    ref2 = _ranking_loss_ref(p2, t2, margin=0.1)
    assert jnp.allclose(loss2, ref2, atol=1e-4, rtol=1e-4), (loss2, ref2)

    # Ties check: many repeated targets -> exercises the exact (sort-based)
    # pair-count path in the wrapper.
    batch3 = 64
    p3 = jax.random.normal(k5, (batch3,), dtype=jnp.float32)
    t3 = jax.random.randint(k6, (batch3,), 0, 3).astype(jnp.float32)
    loss3 = jax.block_until_ready(ranking_loss(p3, t3, margin=0.1))
    ref3 = _ranking_loss_ref(p3, t3, margin=0.1)
    assert jnp.allclose(loss3, ref3, atol=1e-5, rtol=1e-5), (loss3, ref3)

    # Degenerate check: all-equal targets -> no pairs -> loss 0.
    p4 = jax.random.normal(k1, (4,), dtype=jnp.float32)
    t4 = jnp.zeros((4,), dtype=jnp.float32)
    loss4 = jax.block_until_ready(ranking_loss(p4, t4, margin=0.1))
    assert jnp.allclose(loss4, 0.0, atol=1e-6), loss4

    print("KERNEL_OK")
</pallas_src>

<mosaic_0001>
module attributes {stable_mosaic.version = 11 : i64} {
  func.func @_ranking_loss_kernel(%arg0: i32, %arg1: i32, %arg2: memref<8x1xf32, #tpu.memory_space<vmem>>, %arg3: memref<8x1xf32, #tpu.memory_space<vmem>>, %arg4: memref<1x128xf32, #tpu.memory_space<vmem>>, %arg5: memref<1x128xf32, #tpu.memory_space<vmem>>, %arg6: memref<1x8x128xf32, #tpu.memory_space<vmem>>, %arg7: memref<1x128xf32, #tpu.memory_space<vmem>>) attributes {dimension_semantics = [#tpu.dimension_semantics<parallel>, #tpu.dimension_semantics<arbitrary>], iteration_bounds = array<i64: 1, 1>, scalar_prefetch = 0 : i64, scratch_operands = 1 : i64, tpu.core_type = #tpu.core_type<tc>, window_params = [{transform_indices = @transform_0, window_bounds = array<i64: 8, 1>}, {transform_indices = @transform_1, window_bounds = array<i64: 8, 1>}, {transform_indices = @transform_2, window_bounds = array<i64: 1, 128>}, {transform_indices = @transform_3, window_bounds = array<i64: 1, 128>}, {transform_indices = @transform_4, window_bounds = array<i64: 1, 8, 128>}]} {
    %c0_i32 = arith.constant 0 : i32
    %0 = arith.cmpi eq, %arg1, %c0_i32 : i32
    %1 = arith.extui %0 : i1 to i32
    %c0_i32_0 = arith.constant 0 : i32
    %2 = arith.cmpi ne, %1, %c0_i32_0 : i32
    scf.if %2 {
      %cst_18 = arith.constant 0.000000e+00 : f32
      %27 = vector.broadcast %cst_18 : f32 to vector<1x128xf32>
      %c0_19 = arith.constant 0 : index
      %c0_20 = arith.constant 0 : index
      %28 = vector.load %arg7[%c0_19, %c0_20] : memref<1x128xf32, #tpu.memory_space<vmem>>, vector<1x128xf32>
      tpu.vector_store %arg7[%c0_19, %c0_20], %27 {strides = array<i32>} : memref<1x128xf32, #tpu.memory_space<vmem>>, vector<1x128xf32>,
    } else {
    }
    %c0 = arith.constant 0 : index
    %c0_1 = arith.constant 0 : index
    %3 = vector.load %arg2[%c0, %c0_1] : memref<8x1xf32, #tpu.memory_space<vmem>>, vector<8x1xf32>
    %c0_2 = arith.constant 0 : index
    %c0_3 = arith.constant 0 : index
    %4 = vector.load %arg3[%c0_2, %c0_3] : memref<8x1xf32, #tpu.memory_space<vmem>>, vector<8x1xf32>
    %c0_4 = arith.constant 0 : index
    %c0_5 = arith.constant 0 : index
    %5 = vector.load %arg5[%c0_4, %c0_5] : memref<1x128xf32, #tpu.memory_space<vmem>>, vector<1x128xf32>
    %c0_6 = arith.constant 0 : index
    %c0_7 = arith.constant 0 : index
    %6 = vector.load %arg4[%c0_6, %c0_7] : memref<1x128xf32, #tpu.memory_space<vmem>>, vector<1x128xf32>
    %cst = arith.constant 1.000000e-01 : f32
    %7 = vector.broadcast %cst : f32 to vector<1x128xf32>
    %8 = arith.addf %6, %7 : vector<1x128xf32>
    %9 = vector.broadcast %4 : vector<8x1xf32> to vector<8x128xf32>
    %10 = vector.broadcast %5 : vector<1x128xf32> to vector<8x128xf32>
    %11 = arith.cmpf ogt, %9, %10 : vector<8x128xf32>
    %12 = vector.broadcast %8 : vector<1x128xf32> to vector<8x128xf32>
    %13 = vector.broadcast %3 : vector<8x1xf32> to vector<8x128xf32>
    %14 = arith.subf %12, %13 : vector<8x128xf32>
    %cst_8 = arith.constant 0.000000e+00 : f32
    %15 = vector.broadcast %cst_8 : f32 to vector<8x128xf32>
    %16 = arith.maximumf %14, %15 : vector<8x128xf32>
    %cst_9 = arith.constant 0.000000e+00 : f32
    %17 = vector.broadcast %cst_9 : f32 to vector<8x128xf32>
    %18 = arith.select %11, %16, %17 : vector<8x128xi1>, vector<8x128xf32>
    %cst_10 = arith.constant 1.000000e+00 : f32
    %19 = vector.broadcast %cst_10 : f32 to vector<1x8xf32>
    %c0_11 = arith.constant 0 : index
    %c0_12 = arith.constant 0 : index
    %20 = vector.load %arg7[%c0_11, %c0_12] : memref<1x128xf32, #tpu.memory_space<vmem>>, vector<1x128xf32>
    %cst_13 = arith.constant dense<0.000000e+00> : vector<1x128xf32>
    %21 = tpu.matmul %19, %18, %cst_13 {dimension_numbers = #tpu.dot_dimension_numbers<[1], [0], [0], [1], [0, 0, 1, 1], [], []>} : vector<1x8xf32>, vector<8x128xf32>, vector<1x128xf32> -> vector<1x128xf32>
    %22 = arith.addf %20, %21 : vector<1x128xf32>
    %c0_14 = arith.constant 0 : index
    %c0_15 = arith.constant 0 : index
    %23 = vector.load %arg7[%c0_14, %c0_15] : memref<1x128xf32, #tpu.memory_space<vmem>>, vector<1x128xf32>
    tpu.vector_store %arg7[%c0_14, %c0_15], %22 {strides = array<i32>} : memref<1x128xf32, #tpu.memory_space<vmem>>, vector<1x128xf32>,
    %c0_i32_16 = arith.constant 0 : i32
    %24 = arith.cmpi eq, %arg1, %c0_i32_16 : i32
    %25 = arith.extui %24 : i1 to i32
    %c0_i32_17 = arith.constant 0 : i32
    %26 = arith.cmpi ne, %25, %c0_i32_17 : i32
    scf.if %26 {
      %c0_18 = arith.constant 0 : index
      %c0_19 = arith.constant 0 : index
      %27 = vector.load %arg7[%c0_18, %c0_19] : memref<1x128xf32, #tpu.memory_space<vmem>>, vector<1x128xf32>
      %28 = vector.shape_cast %27 : vector<1x128xf32> to vector<1x1x128xf32>
      %cst_20 = arith.constant dense<0.000000e+00> : vector<1xf32>
      %29 = vector.multi_reduction <add>, %28, %cst_20 [1, 2] : vector<1x1x128xf32> to vector<1xf32>
      %30 = vector.shape_cast %29 : vector<1xf32> to vector<1x1x1xf32>
      %31 = vector.extract %30[0, 0, 0] : f32 from vector<1x1x1xf32>
      %32 = vector.broadcast %31 : f32 to vector<1x8x128xf32>
      %c0_21 = arith.constant 0 : index
      %c0_22 = arith.constant 0 : index
      %c0_23 = arith.constant 0 : index
      %33 = vector.load %arg6[%c0_21, %c0_22, %c0_23] : memref<1x8x128xf32, #tpu.memory_space<vmem>>, vector<1x8x128xf32>
      tpu.vector_store %arg6[%c0_21, %c0_22, %c0_23], %32 {strides = array<i32>} : memref<1x8x128xf32, #tpu.memory_space<vmem>>, vector<1x8x128xf32>,
    } else {
    }
    return
  }
  func.func @transform_0(%arg0: i32, %arg1: i32) -> (i32, i32) {
    %c0_i32 = arith.constant 0 : i32
    %c0_i32_0 = arith.constant 0 : i32
    return %arg0, %c0_i32 : i32, i32
  }
  func.func @transform_1(%arg0: i32, %arg1: i32) -> (i32, i32) {
    %c0_i32 = arith.constant 0 : i32
    %c0_i32_0 = arith.constant 0 : i32
    return %arg0, %c0_i32 : i32, i32
  }
  func.func @transform_2(%arg0: i32, %arg1: i32) -> (i32, i32) {
    %c0_i32 = arith.constant 0 : i32
    %c0_i32_0 = arith.constant 0 : i32
    return %c0_i32, %arg1 : i32, i32
  }
  func.func @transform_3(%arg0: i32, %arg1: i32) -> (i32, i32) {
    %c0_i32 = arith.constant 0 : i32
    %c0_i32_0 = arith.constant 0 : i32
    return %c0_i32, %arg1 : i32, i32
  }
  func.func @transform_4(%arg0: i32, %arg1: i32) -> (i32, i32, i32) {
    %c0_i32 = arith.constant 0 : i32
    %c0_i32_0 = arith.constant 0 : i32
    %c0_i32_1 = arith.constant 0 : i32
    return %arg0, %c0_i32, %c0_i32_0 : i32, i32, i32
  }
}

</mosaic_0001>

<bundles_post_ra>
// kernel: tpu_custom_call.1
= control target key start
LH: loop header
LB: loop body
LE: loop exit
PB: predicated region body
PF: predicated region fallthrough
CT: control target
= control target key end

     0   :  { %v204_v1 = vmov 0   ;;  %s258_s0 = inlined_call_operand.vmem [shape: f32[8,1], index: 0, kind: input, shape index: {}]   ;;  %s259_s1 = inlined_call_operand.vmem [shape: f32[8,1], index: 1, kind: input, shape index: {}]   ;;  %s260_s2 = inlined_call_operand.vmem [shape: f32[1,128], index: 2, kind: input, shape index: {}]   ;;  %s261_s3 = inlined_call_operand.vmem [shape: f32[1,128], index: 3, kind: input, shape index: {}]   ;;  %s262_s4 = inlined_call_operand.hbm [shape: f32[1,8,128], index: 4, kind: output, shape index: {}]  }
   0x1   :  { %v23_v0 = vld [vmem:[%s258_s0] sm:$0xff]  ;;  %179 = vset.pattern.permute.xlu0 %v204_v1 }
   0x2   :  { %9 = vsyncpa [#allocation4], 0  ;;  %48 = vperm.xlu0 %179, %v23_v0   ;;  %v24_v2 = vld [vmem:[%s259_s1] sm:$0xff]  ;;  %v205_v3 = vmov 0.0   ;;  %vm206_vm0 = vmmov 0   ;;  %v41_v4 = vlaneseq  ;;  %vm55_vm1 = vcmask 64512  }
   0x3   :  { %22 = vst [vmem:[#allocation2] sm:$0x1] %v205_v3  ;;  %167 = vmatprep.subr.mxu0 %v205_v3  ;;  %169 = vmatprep.mubr.msk.f32.mxu0 %vm206_vm0, %v205_v3  ;;  %v26_v6 = vld [vmem:[%s260_s2] sm:$0x1]  ;;  %v207_v15 = vmov 1.0   ;;  %vm135_vm3 = vcmask 1040384  }
   0x4   :  { %v42_v5 = vshrl.u32 %v41_v4, 7  ;;  %v27_v7 = vadd.f32 0.1, %v26_v6  ;;  %v162_v12 = vld [vmem:[%s261_s3] ss:$0 sm:$0xff]  ;;  %s208_s1 = smov [#allocation3]  }
   0x5   :  { %s154_s2 = sshll.u32 %s208_s1, 4  ;;  %s155_s2 = int_to_ptr.vmem [resolvable:$true] %s154_s2 }
   0x6   :  { %30 = vperm.xlu0 %179, %v24_v2   ;;  %v43_v8 = vsub.s32 0, %v42_v5  ;;  %s180_s22 = scalar_lea.vmem %s155_s2, 128  ;;  %p185_p1 = scmp.lt.s32.totalorder %s155_s2, %s155_s2 }
   0x7   :  { %p181_p0 = scmp.ne.s32.totalorder %s155_s2, %s180_s22  ;;  %p186_p2 = scmp.lt.s32.totalorder %s180_s22, %s180_s22 }
   0x8   :  { %v44_v9 = vrot.slane %v27_v7, %v43_v8 }
   0x9   :  { %p187_p3 = por %p186_p2, %p185_p1 }
   0xa   :  { %v54_v16 = vld [vmem:[#allocation2] sm:$0x1] }
   0xb   :  { %p188_p4 = pnand %p187_p3, %p181_p0 }
  0x81   :  { %v49_v10 = vpop.permute.xlu0 %48 }
  0x82   :  { %v51_v11 = vsub.f32 %v44_v9, %v49_v10 }
  0x84   :  { %v52_v13 = vmax.f32 %v51_v11, 0.0 }
  0x85   :  { %v31_v14 = vpop.permute.xlu0 %30 }
  0x86   :  { %vm39_vm2 = vcmp.gt.f32.partialorder %v31_v14, %v162_v12 }
  0x87   :  { %168 = vmatpush3.msk.msra.mxu0 %vm39_vm2, %v52_v13 }
  0x88   :  { %170 = vmatmul.mubr.msk.f32.vlgmr.msra.gmra.mrb[0].mxu0 %vm55_vm1, %v207_v15 }
 0x15b   :  { %v125_v17 = vpop.f32.mrb[0].mxu0 }
 0x15c   :  { %v129_v18 = vadd.f32 %v125_v17, %v54_v16  ;;  %v171_v19 = vpop.f32.mrb[1].mxu0 }
 0x15e   :  { %130 = vst [vmem:[#allocation2] sm:$0x1] %v129_v18 }
 0x165   :  { %v134_v20 = vld [vmem:[#allocation2] sm:$0x1] }
 0x166   :  { %v136_v21 = vsel %vm135_vm3, %v134_v20, 0.0 }
 0x167   :  { %137 = vadd.xlane.f32.xlu1 %v136_v21 }
 0x1f4   :  { %v138_v22 = vpop.xlane.xlu1 %137 }
 0x1f5   :  { %v139_v23 = vrot.slane %v138_v22, 4 }
 0x1f7   :  { %v140_v24 = vadd.f32 %v139_v23, %v138_v22 }
 0x1f9   :  { %v141_v25 = vrot.slane %v140_v24, 2 }
 0x1fb   :  { %v142_v26 = vadd.f32 %v141_v25, %v140_v24 }
 0x1fd   :  { %v143_v27 = vrot.slane %v142_v26, 1 }
 0x1ff   :  { %v144_v28 = vadd.f32 %v143_v27, %v142_v26 }
 0x201   :  { %172 = vpush %v144_v28 }
 0x232   :  { %s173_s3 = spop %172 }
 0x233   :  { %v146_v29 = vstv %s173_s3 }
 0x234   :  { %147 = vst [vmem:[#allocation3] sm:$0xff] %v146_v29 }
 0x235   :  { %191 = shalt.err (!%p188_p4)
}
 0x236   :  { %s192_s25 = scalar_lea.hbm %s262_s4, 128 }
 0x237   :  { %p193_p5 = scmp.ne.s32.totalorder %s262_s4, %s192_s25  ;;  %p196_p6 = scmp.lt.u32.totalorder %s192_s25, %s262_s4 }
 0x239   :  { %p198_p7 = pnand %p196_p6, %p193_p5 }
 0x23b   :  { %201 = shalt.err (!%p198_p7)
}
 0x23c   :  { %157 = dma.vmem_to_hbm [thread:$0]  %s155_s2, 128, %s262_s4, [#allocation4]  }
 0x23d   :  { %202 = dma.done.wait [#allocation4], 128  }
 0x23e   :  { %203 = vsyncadd [#allocation4], 4294967168 }
 0x23f   :  { %161 = vsyncpa [#allocation4], 1 }

</bundles_post_ra>
